<compile_context>
chip_gen: v5e
topology: v5e:2x2
jax: 0.10.0
libtpu: 0.0.40
codegen_flags: <defaults>
</compile_context>

<pallas_src>
import functools

import jax
import jax.numpy as jnp
from jax.experimental import pallas as pl
from jax.experimental.pallas import tpu as pltpu


def _encode_kernel(x_ref, w_ref, posb_ref, row0_ref, out_ref, *,
                   tn, single_tile, compute_dtype):
    # x_ref:    (tn, P)     patch rows for this (batch, N-tile)
    # w_ref:    (P, D)      projection weight (grid-invariant)
    # posb_ref: (tn, D)     position rows 1..N with the linear bias folded in
    # row0_ref: (1, D)      class_token + position row 0 (grid-invariant)
    # out_ref:  (N+1, D)    resident output slab for this batch element
    j = pl.program_id(1)

    x = x_ref[...]
    if compute_dtype is not None:
        x = x.astype(compute_dtype)      # in-kernel cast: no extra HBM pass
    proj = jnp.dot(x, w_ref[...], preferred_element_type=jnp.float32)
    rows = (proj + posb_ref[...]).astype(out_ref.dtype)

    # Rows [1 + j*tn, 1 + (j+1)*tn) of the (N+1, D) output slab.
    start = 1 if single_tile else 1 + j * tn
    out_ref[pl.ds(start, tn), :] = rows

    # Class-token row (row 0), written once per batch element.
    @pl.when(j == 0)
    def _():
        out_ref[0:1, :] = row0_ref[...]


def _tile_candidates(n, max_tile):
    """Descending candidate row tiles: n itself (always layout-legal) plus
    divisors of n that are multiples of 8 and <= max_tile (no padding ever)."""
    cands = []
    if n <= max_tile:
        cands.append(n)
    for t in range(min(max_tile, n), 0, -1):
        if t != n and n % t == 0 and t % 8 == 0:
            cands.append(t)
    if not cands:
        cands.append(n)
    return cands


_VMEM_BUDGET = 40 * 1024 * 1024   # keep the working set v7x-safe (64 MiB parts)
_VMEM_LIMIT = 48 * 1024 * 1024    # scoped VMEM limit (fine on v5e/v6e/v7x)


def patch_position_encode(patch, weight, bias, class_token, position_embeddings,
                          *, row_tile=1024, compute_dtype=None):
    """patch: (B, N, P); weight: (P, D); bias: (D,);
    class_token: (1, 1, D); position_embeddings: (1, N+1, D).
    Returns (B, N+1, D) == concat([class_token, patch @ W + b], 1) + pos."""
    B, N, P = patch.shape
    D = weight.shape[1]
    out_dtype = patch.dtype

    # ---- batch-invariant prep (tiny, done once in plain JAX) ----------------
    pos = position_embeddings.reshape(N + 1, D)
    row0 = (class_token.reshape(1, D) + pos[0:1, :]).astype(out_dtype)     # (1, D)
    posb = (pos[1:, :] + bias.reshape(1, D)).astype(jnp.float32)           # (N, D)
    if compute_dtype is not None:
        weight = weight.astype(compute_dtype)   # one-time P*D cast, not an HBM pass over activations

    # ---- tile selection: tn | N (no padding), VMEM-budget capped ------------
    in_bytes = patch.dtype.itemsize
    w_bytes = weight.dtype.itemsize
    out_bytes = out_dtype.itemsize
    cands = _tile_candidates(N, row_tile)
    tn = cands[-1]
    for cand in cands:
        est = (2 * cand * P * in_bytes          # patch stream (double-buffered)
               + 2 * cand * D * 4               # pos+bias stream
               + 2 * P * D * w_bytes            # weight
               + 2 * (N + 1) * D * out_bytes    # resident output slab
               + 2 * D * out_bytes)             # row0
        if est <= _VMEM_BUDGET:
            tn = cand
            break
    n_tiles = N // tn
    # TODO(synk): for very large D (>= ~2048) the weight and output slab should
    # additionally be tiled along D to keep double-buffering within v7x VMEM.

    kernel = functools.partial(_encode_kernel, tn=tn,
                               single_tile=(n_tiles == 1),
                               compute_dtype=compute_dtype)

    return pl.pallas_call(
        kernel,
        out_shape=jax.ShapeDtypeStruct((B, N + 1, D), out_dtype),
        grid_spec=pltpu.PrefetchScalarGridSpec(
            num_scalar_prefetch=0,
            grid=(B, n_tiles),
            in_specs=[
                pl.BlockSpec((None, tn, P), lambda b, j: (b, j, 0)),  # patch rows
                pl.BlockSpec((P, D), lambda b, j: (0, 0)),            # weight (invariant)
                pl.BlockSpec((tn, D), lambda b, j: (j, 0)),           # pos + bias rows
                pl.BlockSpec((1, D), lambda b, j: (0, 0)),            # cls + pos[0]
            ],
            out_specs=pl.BlockSpec((None, N + 1, D), lambda b, j: (b, 0, 0)),
        ),
        compiler_params=pltpu.CompilerParams(
            # batch axis parallel (uses both v7x TCs when B >= 2); N-tile axis
            # arbitrary because the per-batch output slab is resident across it.
            dimension_semantics=("parallel", "arbitrary"),
            vmem_limit_bytes=_VMEM_LIMIT,
        ),
    )(patch, weight, posb, row0)


def reference(patch, weight, bias, class_token, position_embeddings):
    B = patch.shape[0]
    proj = jnp.einsum("bnp,pd->bnd", patch, weight) + bias
    cls = jnp.broadcast_to(class_token, (B, 1, class_token.shape[-1]))
    return jnp.concatenate([cls, proj], axis=1) + position_embeddings


if __name__ == "__main__":
    key = jax.random.PRNGKey(0)
    k_patch, k_w, k_b, k_cls, k_pos = jax.random.split(key, 5)

    B = 2     # batch
    N = 8     # num_patches
    P = 64    # patch_dim (inferred by LazyLinear)
    D = 32    # embedding_dim
    # NOTE: production ViT dims (P, D in {768, 1024}) are MXU/lane-dense; this
    # tiny demo (D=32) only exercises correctness, not the fast store path.

    patch = jax.random.normal(k_patch, (B, N, P), dtype=jnp.float32)
    weight = jax.random.normal(k_w, (P, D), dtype=jnp.float32) * 0.02
    bias = jax.random.normal(k_b, (D,), dtype=jnp.float32) * 0.02
    position_embeddings = jax.random.normal(k_pos, (1, N + 1, D),
                                            dtype=jnp.float32) * 0.02
    class_token = jax.random.normal(k_cls, (1, 1, D), dtype=jnp.float32)

    ref = reference(patch, weight, bias, class_token, position_embeddings)

    # f32 path (tight tolerance).
    out = patch_position_encode(patch, weight, bias, class_token,
                                position_embeddings)
    out = jax.block_until_ready(out)
    assert out.shape == (B, N + 1, D), out.shape
    assert jnp.allclose(out, ref, atol=1e-5, rtol=1e-5), "f32 mismatch vs reference"

    # bf16-compute path (in-kernel cast, f32 accumulation) -- looser tolerance.
    out_bf16 = patch_position_encode(patch, weight, bias, class_token,
                                     position_embeddings,
                                     compute_dtype=jnp.bfloat16)
    out_bf16 = jax.block_until_ready(out_bf16)
    assert jnp.allclose(out_bf16, ref, atol=3e-2, rtol=3e-2), \
        "bf16 mismatch vs reference"

    print("KERNEL_OK")
</pallas_src>

<mosaic_0001>
module attributes {stable_mosaic.version = 11 : i64} {
  func.func @_encode_kernel(%arg0: i32, %arg1: i32, %arg2: memref<1x8x64xf32, #tpu.memory_space<vmem>>, %arg3: memref<64x32xf32, #tpu.memory_space<vmem>>, %arg4: memref<8x32xf32, #tpu.memory_space<vmem>>, %arg5: memref<1x32xf32, #tpu.memory_space<vmem>>, %arg6: memref<1x9x32xf32, #tpu.memory_space<vmem>>) attributes {dimension_semantics = [#tpu.dimension_semantics<parallel>, #tpu.dimension_semantics<arbitrary>], iteration_bounds = array<i64: 2, 1>, scalar_prefetch = 0 : i64, scratch_operands = 0 : i64, tpu.core_type = #tpu.core_type<tc>, window_params = [{transform_indices = @transform_0, window_bounds = array<i64: 1, 8, 64>}, {pipeline_mode = #tpu.pipeline_mode<synchronous>, transform_indices = @transform_1, window_bounds = array<i64: 64, 32>}, {transform_indices = @transform_2, window_bounds = array<i64: 8, 32>}, {pipeline_mode = #tpu.pipeline_mode<synchronous>, transform_indices = @transform_3, window_bounds = array<i64: 1, 32>}, {transform_indices = @transform_4, window_bounds = array<i64: 1, 9, 32>}]} {
    %c0 = arith.constant 0 : index
    %c0_0 = arith.constant 0 : index
    %c0_1 = arith.constant 0 : index
    %0 = vector.load %arg2[%c0, %c0_0, %c0_1] : memref<1x8x64xf32, #tpu.memory_space<vmem>>, vector<1x8x64xf32>
    %1 = vector.shape_cast %0 : vector<1x8x64xf32> to vector<8x64xf32>
    %c0_2 = arith.constant 0 : index
    %c0_3 = arith.constant 0 : index
    %2 = vector.load %arg3[%c0_2, %c0_3] : memref<64x32xf32, #tpu.memory_space<vmem>>, vector<64x32xf32>
    %cst = arith.constant dense<0.000000e+00> : vector<8x32xf32>
    %3 = tpu.matmul %1, %2, %cst {dimension_numbers = #tpu.dot_dimension_numbers<[1], [0], [0], [1], [0, 0, 1, 1], [], []>} : vector<8x64xf32>, vector<64x32xf32>, vector<8x32xf32> -> vector<8x32xf32>
    %c0_4 = arith.constant 0 : index
    %c0_5 = arith.constant 0 : index
    %4 = vector.load %arg4[%c0_4, %c0_5] : memref<8x32xf32, #tpu.memory_space<vmem>>, vector<8x32xf32>
    %5 = arith.addf %3, %4 : vector<8x32xf32>
    %c0_6 = arith.constant 0 : index
    %c1 = arith.constant 1 : index
    %c0_7 = arith.constant 0 : index
    %6 = vector.load %arg6[%c0_6, %c1, %c0_7] : memref<1x9x32xf32, #tpu.memory_space<vmem>>, vector<1x8x32xf32>
    %7 = vector.shape_cast %6 : vector<1x8x32xf32> to vector<8x32xf32>
    %8 = vector.shape_cast %5 : vector<8x32xf32> to vector<1x8x32xf32>
    tpu.vector_store %arg6[%c0_6, %c1, %c0_7], %8 {strides = array<i32>} : memref<1x9x32xf32, #tpu.memory_space<vmem>>, vector<1x8x32xf32>,
    %c0_i32 = arith.constant 0 : i32
    %9 = arith.cmpi eq, %arg1, %c0_i32 : i32
    %10 = arith.extui %9 : i1 to i32
    %c0_i32_8 = arith.constant 0 : i32
    %11 = arith.cmpi ne, %10, %c0_i32_8 : i32
    scf.if %11 {
      %c0_9 = arith.constant 0 : index
      %c0_10 = arith.constant 0 : index
      %12 = vector.load %arg5[%c0_9, %c0_10] : memref<1x32xf32, #tpu.memory_space<vmem>>, vector<1x32xf32>
      %c0_11 = arith.constant 0 : index
      %c0_12 = arith.constant 0 : index
      %c0_13 = arith.constant 0 : index
      %13 = vector.load %arg6[%c0_11, %c0_12, %c0_13] : memref<1x9x32xf32, #tpu.memory_space<vmem>>, vector<1x1x32xf32>
      %14 = vector.shape_cast %13 : vector<1x1x32xf32> to vector<1x32xf32>
      %15 = vector.shape_cast %12 : vector<1x32xf32> to vector<1x1x32xf32>
      tpu.vector_store %arg6[%c0_11, %c0_12, %c0_13], %15 {strides = array<i32>} : memref<1x9x32xf32, #tpu.memory_space<vmem>>, vector<1x1x32xf32>,
    } else {
    }
    return
  }
  func.func @transform_0(%arg0: i32, %arg1: i32) -> (i32, i32, i32) {
    %c0_i32 = arith.constant 0 : i32
    %c0_i32_0 = arith.constant 0 : i32
    return %arg0, %arg1, %c0_i32 : i32, i32, i32
  }
  func.func @transform_1(%arg0: i32, %arg1: i32) -> (i32, i32) {
    %c0_i32 = arith.constant 0 : i32
    %c0_i32_0 = arith.constant 0 : i32
    %c0_i32_1 = arith.constant 0 : i32
    return %c0_i32, %c0_i32_0 : i32, i32
  }
  func.func @transform_2(%arg0: i32, %arg1: i32) -> (i32, i32) {
    %c0_i32 = arith.constant 0 : i32
    %c0_i32_0 = arith.constant 0 : i32
    return %arg1, %c0_i32 : i32, i32
  }
  func.func @transform_3(%arg0: i32, %arg1: i32) -> (i32, i32) {
    %c0_i32 = arith.constant 0 : i32
    %c0_i32_0 = arith.constant 0 : i32
    %c0_i32_1 = arith.constant 0 : i32
    return %c0_i32, %c0_i32_0 : i32, i32
  }
  func.func @transform_4(%arg0: i32, %arg1: i32) -> (i32, i32, i32) {
    %c0_i32 = arith.constant 0 : i32
    %c0_i32_0 = arith.constant 0 : i32
    %c0_i32_1 = arith.constant 0 : i32
    return %arg0, %c0_i32, %c0_i32_0 : i32, i32, i32
  }
}

</mosaic_0001>

<bundles_post_ra>
// kernel: tpu_custom_call.1
= control target key start
LH: loop header
LB: loop body
LE: loop exit
PB: predicated region body
PF: predicated region fallthrough
CT: control target
= control target key end

     0   :  { %s446_s15 = smov 0   ;;  %s448_s16 = smov 0   ;;  %s509_s0 = inlined_call_operand.vmem [shape: f32[2,8,64], index: 0, kind: input, shape index: {}]   ;;  %s510_s1 = inlined_call_operand.vmem [shape: f32[64,32], index: 1, kind: input, shape index: {}]   ;;  %s511_s2 = inlined_call_operand.vmem [shape: f32[8,32], index: 2, kind: input, shape index: {}]   ;;  %s512_s3 = inlined_call_operand.vmem [shape: f32[1,32], index: 3, kind: input, shape index: {}]   ;;  %s513_s4 = inlined_call_operand.vmem [shape: f32[2,9,32], index: 4, kind: output, shape index: {}]  }
   0x1   :  { %s450_s17 = smov 0  }
   0x2 LB: > { %s26_s18 = sadd.s32 1, %s415_s16  ;;  %p365_p0 = scmp.ge.s32.totalorder %s419_s17, 1  ;;  %s419_s17 = sphi %s450_s17, %s14_s17   ;;  %s415_s16 = sphi %s448_s16, %s515_s16   ;;  %s411_s15 = sphi %s446_s15, %s514_s15  }
   0x3   : > { %p28_p1 = scmp.ge.s32.totalorder %s26_s18, 2  ;;  %p187_p2 = scmp.lt.s32.totalorder %s419_s17, 3 }
   0x5   : > { %s517_s18 = smov (%p28_p1, %s26_s18), 0  ;;  %p188_p3 = pnand %p365_p0, %p187_p2 }
   0x6   : > { %p219_p4 = scmp.lt.s32.totalorder (!%p188_p3), %s411_s15, 1 }
   0x7   : > { %191 = sbr.rel (%p188_p3) target bundleno = 157 (0x9d), region = 36 }
   0xc   : > { %v243_v0 = vld [vmem:[%s510_s1 + $0x38] sm:$0xff]  ;;  %v242_v1 = vld [vmem:[%s510_s1 + $0x30] sm:$0xff]  ;;  %v241_v2 = vld [vmem:[%s510_s1 + $0x28] sm:$0xff]  ;;  %s519_s15 = smov (!%p219_p4, %s411_s15), 1  ;;  %vm276_vm0 = vcmask 253952   ;;  %vm245_vm1 = vcmask 523264  }
   0xd   : > { %257 = vmatpush.msra.mxu0 %v243_v0  ;;  %v275_v3 = vld [vmem:[%s512_s3] sm:$0x1]  ;;  %s372_s29 = sshll.u32 %s519_s15, 4  ;;  %v239_v5 = vld [vmem:[%s510_s1 + $0x18] sm:$0xff]  ;;  %s366_s9 = sshll.u32 %s519_s15, 3  ;;  %v238_v6 = vld [vmem:[%s510_s1 + $0x10] sm:$0xff] }
   0xe   : > { %v240_v4 = vld [vmem:[%s510_s1 + $0x20] sm:$0xff]  ;;  %s234_s6 = scalar_lea.vmem %s513_s4, %s372_s29  ;;  %v237_v7 = vld [vmem:[%s510_s1 + $0x8] sm:$0xff]  ;;  %s225_s20 = scalar_lea.vmem %s509_s0, %s366_s9  ;;  %vm269_vm2 = vcmask 261120  }
   0xf   : > { %258 = vmatpush.msra.mxu0 %v242_v1  ;;  %277 = vst.msk [vmem:[%s234_s6] sm:$0x1] %vm276_vm0, %v275_v3  ;;  %v236_v8 = vld [vmem:[%s510_s1] sm:$0xff] }
  0x10   : > { %v235_v9 = vld [vmem:[%s225_s20] sm:$0xff] }
  0x11   : > { %259 = vmatpush.msra.mxu0 %v241_v2  ;;  %v244_v10 = vld [vmem:[%s511_s2] sm:$0xff] }
  0x13   : > { %260 = vmatpush.msra.mxu0 %v240_v4 }
  0x15   : > { %261 = vmatpush.msra.mxu0 %v239_v5 }
  0x17   : > { %262 = vmatpush.msra.mxu0 %v238_v6 }
  0x19   : > { %263 = vmatpush.msra.mxu0 %v237_v7 }
  0x1b   : > { %264 = vmatpush.msra.mxu0 %v236_v8 }
  0x1c   : > { %369 = vmatmul.msk.f32.vlgmr.msra.gmra.mxu0 %vm245_vm1, %v235_v9 }
  0x99   : > { %v266_v11 = vpop.f32.mrf.mxu0 }
  0x9a   : > { %v267_v12 = vadd.f32 %v266_v11, %v244_v10 }
  0x9c   : > { %270 = vst.msk [vmem:[%s234_s6 + $0x1] sm:$0xff] %vm269_vm2, %v267_v12 }
  0x9d PF: > { %s14_s17 = sadd.s32 1, %s419_s17   ;;  %s514_s15 = smov %s415_s16 }
  0x9e   : > { %p11_p5 = scmp.ge.s32.totalorder %s14_s17, 4   ;;  %s515_s16 = smov %s517_s18 }
  0xa0   :  { %13 = sbr.rel (!%p11_p5) target bundleno = 2 (0x2), region = 73 }

</bundles_post_ra>
